<compile_context>
chip_gen: v7x
topology: tpu7x:2x2x1
jax: 0.10.0
libtpu: 0.0.40
codegen_flags: <defaults>
</compile_context>

<pallas_src>
import functools
import math

import jax
import jax.numpy as jnp
from jax import lax
from jax.experimental import pallas as pl
from jax.experimental.pallas import tpu as pltpu


# ---------------------------------------------------------------------------
# Kernel 1: one-shot weight-only precompute  W_scaled = T[:, None] * W
# ---------------------------------------------------------------------------
def _scale_weights_kernel(w_ref, q_row_ref, q_col_ref, ws_ref, *, epsilon):
    w = w_ref[...]                        # (cout, cin)  f32
    q_abs_row = jnp.abs(q_row_ref[...])   # (1, cout)
    q_abs_col = jnp.abs(q_col_ref[...])   # (cout, 1)

    # W @ W.T expressed as a (1,1) contraction -> no materialized transpose.
    wwt = lax.dot_general(
        w, w,
        dimension_numbers=(((1,), (1,)), ((), ())),
        preferred_element_type=jnp.float32)             # (cout, cout)

    # |q_inv_i * wwt_ij * q_j| == q_inv_i * |wwt_ij| * q_j  (q_inv, q_abs >= 0)
    s = jnp.sum(jnp.abs(wwt) * q_abs_row, axis=1, keepdims=True)  # (cout, 1)
    denom = s / (q_abs_col + epsilon)                             # (cout, 1)
    t = 2.0 / denom                                               # (cout, 1)

    ws_ref[...] = t * w                                           # (cout, cin)


# ---------------------------------------------------------------------------
# Kernel 2: batch-tiled forward
#   out_tile = x_tile - relu(x_tile @ W.T + b) @ W_scaled
# ---------------------------------------------------------------------------
def _sdp_forward_kernel(x_ref, w_ref, ws_ref, b_ref, o_ref):
    x = x_ref[...]      # (TILE_B, cin)
    w = w_ref[...]      # (cout, cin)
    ws = ws_ref[...]    # (cout, cin) == T[:, None] * W
    b = b_ref[...]      # (1, cout)

    # res = relu(x @ W.T + b) : NT contraction on cin, fed straight to the MXU.
    res = lax.dot_general(
        x, w,
        dimension_numbers=(((1,), (1,)), ((), ())),
        preferred_element_type=jnp.float32) + b          # (TILE_B, cout)
    res = jnp.maximum(res, 0.0)

    # (T * res) @ W  ==  res @ (T[:, None] * W)
    res = jnp.dot(res, ws, preferred_element_type=jnp.float32)  # (TILE_B, cin)
    o_ref[...] = x - res


def _vmem_limit_bytes(tile_b, cin, cout):
    # double-buffered x + out tiles, resident W/W_scaled/bias, intermediates.
    est = 4 * (4 * tile_b * cin + 2 * tile_b * cout + 2 * cout * cin + 2 * cout)
    return int(min(64 * 1024 * 1024, max(32 * 1024 * 1024, 2 * est)))


def sdp_lipschitz_linear(x, weights, bias, q, epsilon=1e-6, tile_b=512):
    """x: (B, cin) f32; weights: (cout, cin); bias: (cout,); q: (cout,)."""
    x = x.astype(jnp.float32)
    weights = weights.astype(jnp.float32)
    B, cin = x.shape
    cout = weights.shape[0]

    b_row = bias.reshape(1, cout).astype(jnp.float32)
    q_row = q.reshape(1, cout).astype(jnp.float32)
    q_col = q.reshape(cout, 1).astype(jnp.float32)

    # -------- one-shot weight precompute (T folded into W) ---------------
    w_scaled = pl.pallas_call(
        functools.partial(_scale_weights_kernel, epsilon=epsilon),
        out_shape=jax.ShapeDtypeStruct((cout, cin), jnp.float32),
        grid=(1,),
        in_specs=[
            pl.BlockSpec((cout, cin), lambda i: (0, 0)),
            pl.BlockSpec((1, cout), lambda i: (0, 0)),
            pl.BlockSpec((cout, 1), lambda i: (0, 0)),
        ],
        out_specs=pl.BlockSpec((cout, cin), lambda i: (0, 0)),
        compiler_params=pltpu.CompilerParams(
            dimension_semantics=("arbitrary",)),
    )(weights, q_row, q_col)

    # -------- batch-tiled main kernel -------------------------------------
    tb = min(tile_b, max(8, -(-B // 8) * 8))   # multiple of 8, capped
    b_pad = -(-B // tb) * tb                   # pad batch to a tile multiple
    x_in = jnp.pad(x, ((0, b_pad - B), (0, 0))) if b_pad != B else x

    out = pl.pallas_call(
        _sdp_forward_kernel,
        out_shape=jax.ShapeDtypeStruct((b_pad, cin), jnp.float32),
        grid=(b_pad // tb,),
        in_specs=[
            pl.BlockSpec((tb, cin), lambda i: (i, 0)),      # x tile
            pl.BlockSpec((cout, cin), lambda i: (0, 0)),    # W (resident)
            pl.BlockSpec((cout, cin), lambda i: (0, 0)),    # W_scaled (resident)
            pl.BlockSpec((1, cout), lambda i: (0, 0)),      # bias (resident)
        ],
        out_specs=pl.BlockSpec((tb, cin), lambda i: (i, 0)),
        compiler_params=pltpu.CompilerParams(
            dimension_semantics=("parallel",),
            vmem_limit_bytes=_vmem_limit_bytes(tb, cin, cout)),
    )(x_in, weights, w_scaled, b_row)

    return out[:B] if b_pad != B else out


def _reference(x, weights, bias, q, epsilon=1e-6):
    res = x @ weights.T + bias[None, :]
    res = jnp.maximum(res, 0.0)
    q_abs = jnp.abs(q)
    q_row = q_abs[None, :]
    q_inv = (1.0 / (q_abs + epsilon))[:, None]
    T = 2.0 / jnp.abs(q_inv * (weights @ weights.T) * q_row).sum(1)
    res = T[None, :] * res
    res = res @ weights
    return x - res


if __name__ == "__main__":
    # Small shapes consistent with the module: batch=8, cin=32, cout=16.
    B, cin, cout = 8, 32, 16
    key = jax.random.PRNGKey(0)
    kx, kw, kb, kq = jax.random.split(key, 4)

    # Parameter init matching the torch __init__ distributions:
    #   weights: xavier_normal_  -> N(0, sqrt(2/(fan_in+fan_out)))
    #   bias:    U(-1/sqrt(fan_in), 1/sqrt(fan_in))
    #   q:       U(0, 1)
    xavier_std = math.sqrt(2.0 / (cin + cout))
    weights = xavier_std * jax.random.normal(kw, (cout, cin), dtype=jnp.float32)
    bound = 1.0 / math.sqrt(cin)
    bias = jax.random.uniform(kb, (cout,), minval=-bound, maxval=bound,
                              dtype=jnp.float32)
    q = jax.random.uniform(kq, (cout,), dtype=jnp.float32)

    x = jax.random.normal(kx, (B, cin), dtype=jnp.float32)

    out = sdp_lipschitz_linear(x, weights, bias, q)
    out = jax.block_until_ready(out)

    ref = _reference(x, weights, bias, q)
    assert out.shape == (B, cin)
    assert jnp.allclose(out, ref, atol=1e-4, rtol=1e-4), "mismatch vs reference"

    print("KERNEL_OK")
</pallas_src>

<mosaic_0001>
module attributes {stable_mosaic.version = 11 : i64} {
  func.func @_scale_weights_kernel(%arg0: i32, %arg1: memref<16x32xf32, #tpu.memory_space<vmem>>, %arg2: memref<1x16xf32, #tpu.memory_space<vmem>>, %arg3: memref<16x1xf32, #tpu.memory_space<vmem>>, %arg4: memref<16x32xf32, #tpu.memory_space<vmem>>) attributes {dimension_semantics = [#tpu.dimension_semantics<arbitrary>], iteration_bounds = array<i64: 1>, scalar_prefetch = 0 : i64, scratch_operands = 0 : i64, tpu.core_type = #tpu.core_type<tc>, window_params = [{pipeline_mode = #tpu.pipeline_mode<synchronous>, transform_indices = @transform_0, window_bounds = array<i64: 16, 32>}, {pipeline_mode = #tpu.pipeline_mode<synchronous>, transform_indices = @transform_1, window_bounds = array<i64: 1, 16>}, {pipeline_mode = #tpu.pipeline_mode<synchronous>, transform_indices = @transform_2, window_bounds = array<i64: 16, 1>}, {pipeline_mode = #tpu.pipeline_mode<synchronous>, transform_indices = @transform_3, window_bounds = array<i64: 16, 32>}]} {
    %c0 = arith.constant 0 : index
    %c0_0 = arith.constant 0 : index
    %0 = vector.load %arg1[%c0, %c0_0] : memref<16x32xf32, #tpu.memory_space<vmem>>, vector<16x32xf32>
    %c0_1 = arith.constant 0 : index
    %c0_2 = arith.constant 0 : index
    %1 = vector.load %arg2[%c0_1, %c0_2] : memref<1x16xf32, #tpu.memory_space<vmem>>, vector<1x16xf32>
    %2 = math.absf %1 : vector<1x16xf32>
    %c0_3 = arith.constant 0 : index
    %c0_4 = arith.constant 0 : index
    %3 = vector.load %arg3[%c0_3, %c0_4] : memref<16x1xf32, #tpu.memory_space<vmem>>, vector<16x1xf32>
    %4 = math.absf %3 : vector<16x1xf32>
    %cst = arith.constant dense<0.000000e+00> : vector<16x16xf32>
    %5 = tpu.matmul %0, %0, %cst {dimension_numbers = #tpu.dot_dimension_numbers<[1], [1], [0], [0], [0, 0, 1, 0], [], []>} : vector<16x32xf32>, vector<16x32xf32>, vector<16x16xf32> -> vector<16x16xf32>
    %6 = math.absf %5 : vector<16x16xf32>
    %7 = vector.broadcast %2 : vector<1x16xf32> to vector<16x16xf32>
    %8 = arith.mulf %6, %7 : vector<16x16xf32>
    %cst_5 = arith.constant dense<0.000000e+00> : vector<16xf32>
    %9 = vector.multi_reduction <add>, %8, %cst_5 [1] : vector<16x16xf32> to vector<16xf32>
    %10 = vector.shape_cast %9 : vector<16xf32> to vector<16x1xf32>
    %cst_6 = arith.constant 9.99999997E-7 : f32
    %11 = vector.broadcast %cst_6 : f32 to vector<16x1xf32>
    %12 = arith.addf %4, %11 : vector<16x1xf32>
    %13 = arith.divf %10, %12 : vector<16x1xf32>
    %cst_7 = arith.constant 2.000000e+00 : f32
    %14 = vector.broadcast %cst_7 : f32 to vector<16x1xf32>
    %15 = arith.divf %14, %13 : vector<16x1xf32>
    %16 = vector.broadcast %15 : vector<16x1xf32> to vector<16x32xf32>
    %17 = arith.mulf %16, %0 : vector<16x32xf32>
    %c0_8 = arith.constant 0 : index
    %c0_9 = arith.constant 0 : index
    %18 = vector.load %arg4[%c0_8, %c0_9] : memref<16x32xf32, #tpu.memory_space<vmem>>, vector<16x32xf32>
    tpu.vector_store %arg4[%c0_8, %c0_9], %17 {strides = array<i32>} : memref<16x32xf32, #tpu.memory_space<vmem>>, vector<16x32xf32>,
    return
  }
  func.func @transform_0(%arg0: i32) -> (i32, i32) {
    %c0_i32 = arith.constant 0 : i32
    %c0_i32_0 = arith.constant 0 : i32
    %c0_i32_1 = arith.constant 0 : i32
    return %c0_i32, %c0_i32_0 : i32, i32
  }
  func.func @transform_1(%arg0: i32) -> (i32, i32) {
    %c0_i32 = arith.constant 0 : i32
    %c0_i32_0 = arith.constant 0 : i32
    %c0_i32_1 = arith.constant 0 : i32
    return %c0_i32, %c0_i32_0 : i32, i32
  }
  func.func @transform_2(%arg0: i32) -> (i32, i32) {
    %c0_i32 = arith.constant 0 : i32
    %c0_i32_0 = arith.constant 0 : i32
    %c0_i32_1 = arith.constant 0 : i32
    return %c0_i32, %c0_i32_0 : i32, i32
  }
  func.func @transform_3(%arg0: i32) -> (i32, i32) {
    %c0_i32 = arith.constant 0 : i32
    %c0_i32_0 = arith.constant 0 : i32
    %c0_i32_1 = arith.constant 0 : i32
    return %c0_i32, %c0_i32_0 : i32, i32
  }
}

</mosaic_0001>

<bundles_post_ra>
// kernel: tpu_custom_call.1
= control target key start
LH: loop header
LB: loop body
LE: loop exit
PB: predicated region body
PF: predicated region fallthrough
CT: control target
= control target key end

     0   :  { %vm23_vm0 = vcmask 261120   ;;  %s278_s0 = inlined_call_operand.vmem [shape: f32[16,32], index: 0, kind: input, shape index: {}]   ;;  %s279_s1 = inlined_call_operand.vmem [shape: f32[1,16], index: 1, kind: input, shape index: {}]   ;;  %s280_s2 = inlined_call_operand.vmem [shape: f32[16,1], index: 2, kind: input, shape index: {}]   ;;  %s281_s3 = inlined_call_operand.hbm [shape: f32[16,32], index: 3, kind: output, shape index: {}]  }
   0x1   :  { %v15_v0 = vld [vmem:[%s278_s0] sm:$0xff]  ;;  %v16_v1 = vld [vmem:[%s278_s0 + $0x8] sm:$0xff] }
   0x2   :  { %8 = vsyncpa [#allocation3], 0  ;;  %v177_v2 = vpack.c.bf16 %v16_v1, %v15_v0  ;;  %174 = vmatprep.mubr.msk.f32.mxu0 %vm23_vm0, %v15_v0  ;;  %v108_v3 = vlaneseq  ;;  %v17_v5 = vld [vmem:[%s279_s1] sm:$0x1]  ;;  %vm115_vm2 = vcmask 130048   ;;  %v221_v17 = vmov 0  }
   0x3   :  { %vm178_vm1 = vmpackc.low %vm23_vm0, %vm23_vm0  ;;  %v18_v6 = vand.u32 2147483647, %v17_v5  ;;  %187 = vset.pattern.permute.xlu1 %v221_v17  ;;  %188 = vset.pattern.permute.xlu0 %v221_v17  ;;  %v19_v18 = vld [vmem:[%s280_s2] sm:$0xff]  ;;  %v20_v20 = vld [vmem:[%s280_s2 + $0x8] sm:$0xff]  ;;  %s222_s2 = smov [#allocation2]  }
   0x4   :  { %179 = vmatprep.subr.msk.bf16.mxu0 %vm178_vm1, %v177_v2  ;;  %v109_v4 = vshrl.u32 %v108_v3, 7  ;;  %v21_v19 = vand.u32 2147483647, %v19_v18  ;;  %v22_v22 = vand.u32 2147483647, %v20_v20  ;;  %s151_s20 = sshll.u32 %s222_s2, 4  ;;  %s152_s20 = int_to_ptr.vmem [resolvable:$true] %s151_s20 }
   0x5   :  { %182 = vmatpush3.bf16.xpose.msk.msra.mxu0 %vm178_vm1, %v177_v2  ;;  %s197_s21 = scalar_lea.vmem %s152_s20, 256  ;;  %p202_p1 = scmp.lt.s32.totalorder %s152_s20, %s152_s20 }
   0x6   :  { %v110_v7 = vsub.s32 0, %v109_v4  ;;  %v122_v21 = vadd.f32 1e-06, %v21_v19  ;;  %v123_v23 = vadd.f32 1e-06, %v22_v22  ;;  %p198_p0 = scmp.ne.s32.totalorder %s152_s20, %s197_s21  ;;  %p203_p2 = scmp.lt.s32.totalorder %s197_s21, %s197_s21 }
   0x8   :  { %v111_v9 = vrot.slane %v18_v6, %v110_v7  ;;  %189 = vrcp.f32 %v122_v21  ;;  %p204_p3 = por %p203_p2, %p202_p1 }
   0x9   :  { %191 = vrcp.f32 %v123_v23 }
   0xa   :  { %p205_p4 = pnand %p204_p3, %p198_p0 }
   0xc   :  { %175 = vmatmul.mubr.msk.f32.vlgmr.msra.gmra.mrb[0].mxu0 %vm23_vm0, %v16_v1 }
  0x12   :  { %v190_v24 = vpop.eup %189 }
  0x13   :  { %v192_v27 = vpop.eup %191 }
  0xdf   :  { %v176_v8 = vpop.f32.mrb[0].mxu0 }
  0xe0   :  { %v96_v10 = vpop.f32.mrb[1].mxu0  ;;  %v106_v11 = vand.u32 2147483647, %v176_v8 }
  0xe1   :  { %v105_v12 = vand.u32 2147483647, %v96_v10 }
  0xe2   :  { %v114_v15 = vmul.f32 %v111_v9, %v106_v11 }
  0xe3   :  { %v113_v13 = vmul.f32 %v111_v9, %v105_v12 }
  0xe4   :  { %v119_v16 = vsel %vm115_vm2, %v114_v15, 0.0 }
  0xe5   :  { %v116_v14 = vsel %vm115_vm2, %v113_v13, 0.0 }
  0xe6   :  { %117 = vadd.xlane.f32.xlu0 %v116_v14 }
  0xea   :  { %120 = vadd.xlane.f32.xlu0 %v119_v16 }
 0x173   :  { %v118_v25 = vpop.xlane.xlu0 %117 }
 0x174   :  { %v125_v26 = vmul.f32 %v190_v24, %v118_v25 }
 0x176   :  { %193 = vrcp.f32 %v125_v26 }
 0x177   :  { %v121_v28 = vpop.xlane.xlu0 %120 }
 0x178   :  { %v127_v29 = vmul.f32 %v192_v27, %v121_v28 }
 0x17a   :  { %195 = vrcp.f32 %v127_v29 }
 0x180   :  { %v194_v30 = vpop.eup %193 }
 0x181   :  { %v129_v31 = vmul.f32 2.0, %v194_v30 }
 0x183   :  { %134 = vperm.xlu1 %187, %v129_v31  }
 0x184   :  { %v196_v32 = vpop.eup %195 }
 0x185   :  { %v131_v33 = vmul.f32 2.0, %v196_v32 }
 0x187   :  { %139 = vperm.xlu1 %187, %v131_v33  }
 0x202   :  { %v135_v34 = vpop.permute.xlu1 %134 }
 0x203   :  { %v142_v35 = vmul.f32 %v135_v34, %v15_v0 }
 0x205   :  { %144 = vst.msk [vmem:[#allocation2] sm:$0xff] %vm23_vm0, %v142_v35 }
 0x206   :  { %v140_v36 = vpop.permute.xlu1 %139 }
 0x207   :  { %v143_v37 = vmul.f32 %v140_v36, %v16_v1 }
 0x209   :  { %145 = vst.msk [vmem:[#allocation2 + $0x8] sm:$0xff] %vm23_vm0, %v143_v37 }
 0x20a   :  { %208 = shalt.err (!%p205_p4)
}
 0x20b   :  { %s209_s24 = scalar_lea.hbm %s281_s3, 256 }
 0x20c   :  { %p210_p5 = scmp.ne.s32.totalorder %s281_s3, %s209_s24  ;;  %p213_p6 = scmp.lt.u32.totalorder %s209_s24, %s281_s3 }
 0x20e   :  { %p215_p7 = pnand %p213_p6, %p210_p5 }
 0x210   :  { %218 = shalt.err (!%p215_p7)
}
 0x211   :  { %s223_s29 = smov 128   ;;  %s224_s30 = smov 8  }
 0x212   :  { %157 = dma.vmem_to_hbm [thread:$0]  %s152_s20, 256, %s281_s3, [#allocation3], %s223_s29, %s223_s29, %s224_s30  }
 0x213   :  { %219 = dma.done.wait [#allocation3], 256  }
 0x214   :  { %220 = vsyncadd [#allocation3], 4294967040 }
 0x215   :  { %161 = vsyncpa [#allocation3], 1 }

</bundles_post_ra>
